<compile_context>
chip_gen: v7x
topology: tpu7x:2x2x1
jax: 0.10.0
libtpu: 0.0.40
codegen_flags: <defaults>
</compile_context>

<pallas_src>
import functools

import jax
import jax.numpy as jnp
import numpy as np
from jax.experimental import pallas as pl
from jax.experimental.pallas import tpu as pltpu


def _dice_partials_kernel(tbl_ref, pred_ref, true_ref, inter_ref, psum_ref, tsum_ref,
                          *, steps_per_chunk, tile_m, hw, need_mask):
    """Accumulate per-class intersection / pred-sum / true-sum for one (batch, chunk)."""
    del tbl_ref  # the block-index table is consumed only by the index maps
    p = pl.program_id(1)
    k = pl.program_id(2)

    # Output blocks are VMEM-resident across the trailing "arbitrary" axis, so we
    # accumulate straight into them (no scratch buffers, no finalize copy).
    @pl.when(k == 0)
    def _():
        inter_ref[...] = jnp.zeros_like(inter_ref)
        psum_ref[...] = jnp.zeros_like(psum_ref)
        tsum_ref[...] = jnp.zeros_like(tsum_ref)

    pred = pred_ref[...].astype(jnp.float32)   # (C, tile_m) — in-kernel upcast
    true = true_ref[...].astype(jnp.float32)   # (1, tile_m)

    if need_mask:
        # Global column offset of this (chunk, step); columns >= hw are either the
        # ragged tail of the last tile or a phantom step — zero them before reducing.
        col0 = (p * steps_per_chunk + k) * tile_m
        cols = jax.lax.broadcasted_iota(jnp.int32, (1, tile_m), 1) + col0
        valid = cols < hw
        pred = jnp.where(valid, pred, 0.0)
        true = jnp.where(valid, true, 0.0)

    # Lane reductions: vreg-wise VPU adds + one cross-lane XLU reduce each — tiny
    # compared to the per-step DMA at the chosen tile size.
    # TODO(synk): if a v7x bundle dump ever shows the XLU reduce as the critical slot,
    # switch to a (C, 128) VPU accumulator with a single lane reduce per chunk.
    inter_ref[...] += jnp.sum(pred * true, axis=1, keepdims=True)   # (C, 1)
    psum_ref[...] += jnp.sum(pred, axis=1, keepdims=True)           # (C, 1)
    tsum_ref[...] += jnp.sum(true, axis=1, keepdims=True)           # (1, 1)


def _vmem_capacity_bytes():
    try:
        return int(pltpu.get_tpu_info().vmem_capacity_bytes)
    except Exception:
        return 64 * 1024 * 1024  # conservative fallback: v7x per-TensorCore VMEM


def multiclass_soft_dice_loss(y_pred, y_true, epsilon=1e-5, tile_lanes=None):
    """y_pred: (N, C, H, W); y_true: (N, H, W). Returns scalar f32 loss."""
    N, C, H, W = y_pred.shape
    assert y_true.shape == (N, H, W)
    HW = H * W

    # Free reshapes only — native dtype/layout in HBM (no moveaxis, no cast, no pad).
    pred3 = y_pred.reshape(N, C, HW)
    true3 = y_true.reshape(N, 1, HW)

    itemsize = jnp.dtype(y_pred.dtype).itemsize

    # ---- generation-aware tile sizing (this kernel is HBM-bandwidth bound) ----
    if tile_lanes is None:
        vmem_cap = _vmem_capacity_bytes()
        # Budget for double-buffered input blocks: well inside scoped VMEM on every
        # generation (v7x 64 MiB physical, v5e/v6e 128 MiB).
        input_budget = min(int(vmem_cap * 0.35), 40 * 1024 * 1024)
        # ~4-8 MiB combined (pred + true) block per grid step amortizes the ~0.35 us
        # per-step pipeline overhead to >85% of HBM roofline on all generations.
        block_target = min(8 * 1024 * 1024, input_budget // 2)
        tile_cap = max(128, (block_target // ((C + 1) * itemsize)) // 128 * 128)
    else:
        tile_cap = max(128, (int(tile_lanes) // 128) * 128)

    if HW <= tile_cap:
        tile_m = HW          # full-extent block: always a legal block shape
    else:
        tile_m = tile_cap    # multiple of 128; ragged tail handled by in-kernel mask

    n_tiles = pl.cdiv(HW, tile_m)          # spatial tiles per batch element
    # 2-way spatial split keeps both v7x TensorCores busy when N is small or odd;
    # on v5e/v6e (1 TC) it is just an extra (cheap) grid dimension.
    n_chunks = 2 if n_tiles >= 2 else 1
    steps = pl.cdiv(n_tiles, n_chunks)     # grid steps per chunk (last may be phantom)

    need_mask = (n_tiles * tile_m != HW) or (n_chunks * steps != n_tiles)

    # Scalar-prefetched block-index table: clamps phantom steps (chunk ran past the
    # last tile when n_tiles is odd) to the last valid tile, so no DMA is ever issued
    # out of bounds; the in-kernel mask zeroes their contribution.
    blk_tbl = jnp.asarray(
        np.minimum(np.arange(n_chunks * steps).reshape(n_chunks, steps), n_tiles - 1),
        dtype=jnp.int32)

    kernel = functools.partial(
        _dice_partials_kernel,
        steps_per_chunk=steps, tile_m=tile_m, hw=HW, need_mask=need_mask)

    # Explicit VMEM limit so the large-block regime compiles regardless of the
    # scoped default (16 MiB v5e / 32 MiB v6e, v7x); keep well under v7x's 64 MiB.
    block_bytes = (C + 1) * tile_m * itemsize
    vmem_limit = int(min(_vmem_capacity_bytes() * 0.7,
                         2 * block_bytes + 8 * 1024 * 1024))
    vmem_limit = max(vmem_limit, 16 * 1024 * 1024)

    inter_p, psum_p, tsum_p = pl.pallas_call(
        kernel,
        out_shape=(
            jax.ShapeDtypeStruct((N, n_chunks, C, 1), jnp.float32),
            jax.ShapeDtypeStruct((N, n_chunks, C, 1), jnp.float32),
            jax.ShapeDtypeStruct((N, n_chunks, 1, 1), jnp.float32),
        ),
        grid_spec=pltpu.PrefetchScalarGridSpec(
            num_scalar_prefetch=1,
            grid=(N, n_chunks, steps),
            in_specs=[
                pl.BlockSpec((None, C, tile_m),
                             lambda n, p, k, tbl: (n, 0, tbl[p, k])),
                pl.BlockSpec((None, 1, tile_m),
                             lambda n, p, k, tbl: (n, 0, tbl[p, k])),
            ],
            out_specs=[
                pl.BlockSpec((None, None, C, 1),
                             lambda n, p, k, tbl: (n, p, 0, 0)),
                pl.BlockSpec((None, None, C, 1),
                             lambda n, p, k, tbl: (n, p, 0, 0)),
                pl.BlockSpec((None, None, 1, 1),
                             lambda n, p, k, tbl: (n, p, 0, 0)),
            ],
        ),
        compiler_params=pltpu.CompilerParams(
            dimension_semantics=("parallel", "parallel", "arbitrary"),
            vmem_limit_bytes=vmem_limit,
        ),
    )(blk_tbl, pred3, true3)

    # Tiny finalize (2*C + 1 numbers per batch/chunk) in plain JAX; epsilon never
    # enters the kernel.
    eps = jnp.float32(epsilon)
    inter = jnp.sum(inter_p[..., 0], axis=(0, 1))   # (C,)
    psum = jnp.sum(psum_p[..., 0], axis=(0, 1))     # (C,)
    tsum = jnp.sum(tsum_p)                          # ()
    dice = (2.0 * inter + eps) / (tsum + psum + eps)
    return jnp.mean(1.0 - dice)


def _reference_loss(y_pred, y_true, epsilon=1e-5):
    num_classes = y_pred.shape[1]
    dice_sum = 0.0
    for c in range(num_classes):
        class_pred = y_pred[:, c]
        intersection = jnp.sum(y_true * class_pred)
        union = jnp.sum(y_true) + jnp.sum(class_pred)
        dice_score = (2.0 * intersection + epsilon) / (union + epsilon)
        dice_sum += 1.0 - dice_score
    return dice_sum / num_classes


if __name__ == "__main__":
    key = jax.random.PRNGKey(0)
    k1, k2, k3, k4 = jax.random.split(key, 4)

    # Primary shape implied by the module: (N, C, H, W) = (2, 4, 16, 16).
    N, C, H, W = 2, 4, 16, 16
    logits = jax.random.normal(k1, (N, C, H, W), dtype=jnp.float32)
    y_pred = jax.nn.softmax(logits, axis=1)                                   # (N, C, H, W)
    y_true = (jax.random.uniform(k2, (N, H, W)) > 0.5).astype(jnp.float32)    # (N, H, W)

    loss = jax.block_until_ready(multiclass_soft_dice_loss(y_pred, y_true, epsilon=1e-5))
    ref = _reference_loss(y_pred, y_true, epsilon=1e-5)
    np.testing.assert_allclose(np.asarray(loss), np.asarray(ref), rtol=1e-5, atol=1e-6)

    # Exercise the masked ragged-tail / 2-way chunk / phantom-step path with a tiny
    # forced tile: HW = 374 -> 3 tiles of 128 -> 2 chunks of 2 steps (1 phantom).
    N2, C2, H2, W2 = 2, 3, 11, 34
    logits2 = jax.random.normal(k3, (N2, C2, H2, W2), dtype=jnp.float32)
    y_pred2 = jax.nn.softmax(logits2, axis=1)
    y_true2 = (jax.random.uniform(k4, (N2, H2, W2)) > 0.5).astype(jnp.float32)
    loss2 = jax.block_until_ready(
        multiclass_soft_dice_loss(y_pred2, y_true2, epsilon=1e-5, tile_lanes=128))
    ref2 = _reference_loss(y_pred2, y_true2, epsilon=1e-5)
    np.testing.assert_allclose(np.asarray(loss2), np.asarray(ref2), rtol=1e-5, atol=1e-6)

    print("KERNEL_OK")
</pallas_src>

<mosaic_0001>
module attributes {stable_mosaic.version = 11 : i64} {
  func.func @_dice_partials_kernel(%arg0: i32, %arg1: i32, %arg2: i32, %arg3: memref<1x1xi32, #tpu.memory_space<smem>>, %arg4: memref<1x4x256xf32, #tpu.memory_space<vmem>>, %arg5: memref<1x1x256xf32, #tpu.memory_space<vmem>>, %arg6: memref<1x1x4x1xf32, #tpu.memory_space<vmem>>, %arg7: memref<1x1x4x1xf32, #tpu.memory_space<vmem>>, %arg8: memref<1x1x1x1xf32, #tpu.memory_space<vmem>>) attributes {dimension_semantics = [#tpu.dimension_semantics<parallel>, #tpu.dimension_semantics<parallel>, #tpu.dimension_semantics<arbitrary>], iteration_bounds = array<i64: 2, 1, 1>, scalar_prefetch = 1 : i64, scratch_operands = 0 : i64, tpu.core_type = #tpu.core_type<tc>, window_params = [{transform_indices = @transform_0, window_bounds = array<i64: 1, 4, 256>}, {transform_indices = @transform_1, window_bounds = array<i64: 1, 1, 256>}, {transform_indices = @transform_2, window_bounds = array<i64: 1, 1, 4, 1>}, {transform_indices = @transform_3, window_bounds = array<i64: 1, 1, 4, 1>}, {transform_indices = @transform_4, window_bounds = array<i64: 1, 1, 1, 1>}]} {
    %c0_i32 = arith.constant 0 : i32
    %0 = arith.cmpi eq, %arg2, %c0_i32 : i32
    %1 = arith.extui %0 : i1 to i32
    %c0_i32_0 = arith.constant 0 : i32
    %2 = arith.cmpi ne, %1, %c0_i32_0 : i32
    scf.if %2 {
      %cst_32 = arith.constant 0.000000e+00 : f32
      %33 = vector.broadcast %cst_32 : f32 to vector<4x1xf32>
      %c0_33 = arith.constant 0 : index
      %c0_34 = arith.constant 0 : index
      %c0_35 = arith.constant 0 : index
      %c0_36 = arith.constant 0 : index
      %34 = vector.load %arg6[%c0_33, %c0_34, %c0_35, %c0_36] : memref<1x1x4x1xf32, #tpu.memory_space<vmem>>, vector<1x1x4x1xf32>
      %35 = vector.shape_cast %34 : vector<1x1x4x1xf32> to vector<4x1xf32>
      %36 = vector.shape_cast %33 : vector<4x1xf32> to vector<1x1x4x1xf32>
      tpu.vector_store %arg6[%c0_33, %c0_34, %c0_35, %c0_36], %36 {strides = array<i32>} : memref<1x1x4x1xf32, #tpu.memory_space<vmem>>, vector<1x1x4x1xf32>,
      %cst_37 = arith.constant 0.000000e+00 : f32
      %37 = vector.broadcast %cst_37 : f32 to vector<4x1xf32>
      %c0_38 = arith.constant 0 : index
      %c0_39 = arith.constant 0 : index
      %c0_40 = arith.constant 0 : index
      %c0_41 = arith.constant 0 : index
      %38 = vector.load %arg7[%c0_38, %c0_39, %c0_40, %c0_41] : memref<1x1x4x1xf32, #tpu.memory_space<vmem>>, vector<1x1x4x1xf32>
      %39 = vector.shape_cast %38 : vector<1x1x4x1xf32> to vector<4x1xf32>
      %40 = vector.shape_cast %37 : vector<4x1xf32> to vector<1x1x4x1xf32>
      tpu.vector_store %arg7[%c0_38, %c0_39, %c0_40, %c0_41], %40 {strides = array<i32>} : memref<1x1x4x1xf32, #tpu.memory_space<vmem>>, vector<1x1x4x1xf32>,
      %cst_42 = arith.constant 0.000000e+00 : f32
      %41 = vector.broadcast %cst_42 : f32 to vector<1x1xf32>
      %c0_43 = arith.constant 0 : index
      %c0_44 = arith.constant 0 : index
      %c0_45 = arith.constant 0 : index
      %c0_46 = arith.constant 0 : index
      %42 = vector.load %arg8[%c0_43, %c0_44, %c0_45, %c0_46] : memref<1x1x1x1xf32, #tpu.memory_space<vmem>>, vector<1x1x1x1xf32>
      %43 = vector.shape_cast %42 : vector<1x1x1x1xf32> to vector<1x1xf32>
      %44 = vector.shape_cast %41 : vector<1x1xf32> to vector<1x1x1x1xf32>
      tpu.vector_store %arg8[%c0_43, %c0_44, %c0_45, %c0_46], %44 {strides = array<i32>} : memref<1x1x1x1xf32, #tpu.memory_space<vmem>>, vector<1x1x1x1xf32>,
    } else {
    }
    %c0 = arith.constant 0 : index
    %c0_1 = arith.constant 0 : index
    %c0_2 = arith.constant 0 : index
    %3 = vector.load %arg4[%c0, %c0_1, %c0_2] : memref<1x4x256xf32, #tpu.memory_space<vmem>>, vector<1x4x256xf32>
    %4 = vector.shape_cast %3 : vector<1x4x256xf32> to vector<4x256xf32>
    %c0_3 = arith.constant 0 : index
    %c0_4 = arith.constant 0 : index
    %c0_5 = arith.constant 0 : index
    %5 = vector.load %arg5[%c0_3, %c0_4, %c0_5] : memref<1x1x256xf32, #tpu.memory_space<vmem>>, vector<1x1x256xf32>
    %6 = vector.shape_cast %5 : vector<1x1x256xf32> to vector<1x256xf32>
    %c0_6 = arith.constant 0 : index
    %c0_7 = arith.constant 0 : index
    %c0_8 = arith.constant 0 : index
    %c0_9 = arith.constant 0 : index
    %7 = vector.load %arg6[%c0_6, %c0_7, %c0_8, %c0_9] : memref<1x1x4x1xf32, #tpu.memory_space<vmem>>, vector<1x1x4x1xf32>
    %8 = vector.shape_cast %7 : vector<1x1x4x1xf32> to vector<4x1xf32>
    %9 = vector.broadcast %6 : vector<1x256xf32> to vector<4x256xf32>
    %10 = arith.mulf %4, %9 : vector<4x256xf32>
    %cst = arith.constant dense<0.000000e+00> : vector<4xf32>
    %11 = vector.multi_reduction <add>, %10, %cst [1] : vector<4x256xf32> to vector<4xf32>
    %12 = vector.shape_cast %11 : vector<4xf32> to vector<4x1xf32>
    %13 = arith.addf %8, %12 : vector<4x1xf32>
    %c0_10 = arith.constant 0 : index
    %c0_11 = arith.constant 0 : index
    %c0_12 = arith.constant 0 : index
    %c0_13 = arith.constant 0 : index
    %14 = vector.load %arg6[%c0_10, %c0_11, %c0_12, %c0_13] : memref<1x1x4x1xf32, #tpu.memory_space<vmem>>, vector<1x1x4x1xf32>
    %15 = vector.shape_cast %14 : vector<1x1x4x1xf32> to vector<4x1xf32>
    %16 = vector.shape_cast %13 : vector<4x1xf32> to vector<1x1x4x1xf32>
    tpu.vector_store %arg6[%c0_10, %c0_11, %c0_12, %c0_13], %16 {strides = array<i32>} : memref<1x1x4x1xf32, #tpu.memory_space<vmem>>, vector<1x1x4x1xf32>,
    %c0_14 = arith.constant 0 : index
    %c0_15 = arith.constant 0 : index
    %c0_16 = arith.constant 0 : index
    %c0_17 = arith.constant 0 : index
    %17 = vector.load %arg7[%c0_14, %c0_15, %c0_16, %c0_17] : memref<1x1x4x1xf32, #tpu.memory_space<vmem>>, vector<1x1x4x1xf32>
    %18 = vector.shape_cast %17 : vector<1x1x4x1xf32> to vector<4x1xf32>
    %cst_18 = arith.constant dense<0.000000e+00> : vector<4xf32>
    %19 = vector.multi_reduction <add>, %4, %cst_18 [1] : vector<4x256xf32> to vector<4xf32>
    %20 = vector.shape_cast %19 : vector<4xf32> to vector<4x1xf32>
    %21 = arith.addf %18, %20 : vector<4x1xf32>
    %c0_19 = arith.constant 0 : index
    %c0_20 = arith.constant 0 : index
    %c0_21 = arith.constant 0 : index
    %c0_22 = arith.constant 0 : index
    %22 = vector.load %arg7[%c0_19, %c0_20, %c0_21, %c0_22] : memref<1x1x4x1xf32, #tpu.memory_space<vmem>>, vector<1x1x4x1xf32>
    %23 = vector.shape_cast %22 : vector<1x1x4x1xf32> to vector<4x1xf32>
    %24 = vector.shape_cast %21 : vector<4x1xf32> to vector<1x1x4x1xf32>
    tpu.vector_store %arg7[%c0_19, %c0_20, %c0_21, %c0_22], %24 {strides = array<i32>} : memref<1x1x4x1xf32, #tpu.memory_space<vmem>>, vector<1x1x4x1xf32>,
    %c0_23 = arith.constant 0 : index
    %c0_24 = arith.constant 0 : index
    %c0_25 = arith.constant 0 : index
    %c0_26 = arith.constant 0 : index
    %25 = vector.load %arg8[%c0_23, %c0_24, %c0_25, %c0_26] : memref<1x1x1x1xf32, #tpu.memory_space<vmem>>, vector<1x1x1x1xf32>
    %26 = vector.shape_cast %25 : vector<1x1x1x1xf32> to vector<1x1xf32>
    %cst_27 = arith.constant dense<0.000000e+00> : vector<1xf32>
    %27 = vector.multi_reduction <add>, %6, %cst_27 [1] : vector<1x256xf32> to vector<1xf32>
    %28 = vector.shape_cast %27 : vector<1xf32> to vector<1x1xf32>
    %29 = arith.addf %26, %28 : vector<1x1xf32>
    %c0_28 = arith.constant 0 : index
    %c0_29 = arith.constant 0 : index
    %c0_30 = arith.constant 0 : index
    %c0_31 = arith.constant 0 : index
    %30 = vector.load %arg8[%c0_28, %c0_29, %c0_30, %c0_31] : memref<1x1x1x1xf32, #tpu.memory_space<vmem>>, vector<1x1x1x1xf32>
    %31 = vector.shape_cast %30 : vector<1x1x1x1xf32> to vector<1x1xf32>
    %32 = vector.shape_cast %29 : vector<1x1xf32> to vector<1x1x1x1xf32>
    tpu.vector_store %arg8[%c0_28, %c0_29, %c0_30, %c0_31], %32 {strides = array<i32>} : memref<1x1x1x1xf32, #tpu.memory_space<vmem>>, vector<1x1x1x1xf32>,
    return
  }
  func.func @transform_0(%arg0: i32, %arg1: i32, %arg2: i32, %arg3: memref<1x1xi32, #tpu.memory_space<smem>>) -> (i32, i32, i32) {
    %0 = arith.index_cast %arg1 : i32 to index
    %1 = arith.index_cast %arg2 : i32 to index
    %2 = memref.load %arg3[%0, %1] : memref<1x1xi32, #tpu.memory_space<smem>>
    %c0_i32 = arith.constant 0 : i32
    %c0_i32_0 = arith.constant 0 : i32
    return %arg0, %c0_i32, %2 : i32, i32, i32
  }
  func.func @transform_1(%arg0: i32, %arg1: i32, %arg2: i32, %arg3: memref<1x1xi32, #tpu.memory_space<smem>>) -> (i32, i32, i32) {
    %0 = arith.index_cast %arg1 : i32 to index
    %1 = arith.index_cast %arg2 : i32 to index
    %2 = memref.load %arg3[%0, %1] : memref<1x1xi32, #tpu.memory_space<smem>>
    %c0_i32 = arith.constant 0 : i32
    %c0_i32_0 = arith.constant 0 : i32
    return %arg0, %c0_i32, %2 : i32, i32, i32
  }
  func.func @transform_2(%arg0: i32, %arg1: i32, %arg2: i32, %arg3: memref<1x1xi32, #tpu.memory_space<smem>>) -> (i32, i32, i32, i32) {
    %c0_i32 = arith.constant 0 : i32
    %c0_i32_0 = arith.constant 0 : i32
    %c0_i32_1 = arith.constant 0 : i32
    return %arg0, %arg1, %c0_i32, %c0_i32_0 : i32, i32, i32, i32
  }
  func.func @transform_3(%arg0: i32, %arg1: i32, %arg2: i32, %arg3: memref<1x1xi32, #tpu.memory_space<smem>>) -> (i32, i32, i32, i32) {
    %c0_i32 = arith.constant 0 : i32
    %c0_i32_0 = arith.constant 0 : i32
    %c0_i32_1 = arith.constant 0 : i32
    return %arg0, %arg1, %c0_i32, %c0_i32_0 : i32, i32, i32, i32
  }
  func.func @transform_4(%arg0: i32, %arg1: i32, %arg2: i32, %arg3: memref<1x1xi32, #tpu.memory_space<smem>>) -> (i32, i32, i32, i32) {
    %c0_i32 = arith.constant 0 : i32
    %c0_i32_0 = arith.constant 0 : i32
    %c0_i32_1 = arith.constant 0 : i32
    return %arg0, %arg1, %c0_i32, %c0_i32_0 : i32, i32, i32, i32
  }
}

</mosaic_0001>

<bundles_post_ra>
// kernel: tpu_custom_call.1
= control target key start
LH: loop header
LB: loop body
LE: loop exit
PB: predicated region body
PF: predicated region fallthrough
CT: control target
= control target key end

     0   :  { %s985_s0 = inlined_call_operand.<no memory space> [shape: s32[1,1], index: 0, kind: input, shape index: {}]   ;;  %s986_s1 = inlined_call_operand.hbm [shape: f32[2,4,256], index: 1, kind: input, shape index: {}]   ;;  %s987_s2 = inlined_call_operand.vmem [shape: f32[2,1,256], index: 2, kind: input, shape index: {}]   ;;  %s988_s3 = inlined_call_operand.vmem [shape: f32[2,1,4,1], index: 3, kind: output, shape index: {0}]   ;;  %s989_s4 = inlined_call_operand.vmem [shape: f32[2,1,4,1], index: 4, kind: output, shape index: {1}]   ;;  %s990_s5 = inlined_call_operand.vmem [shape: f32[2,1,1,1], index: 5, kind: output, shape index: {2}]  }
   0x1   :  { %11 = sst [smem:[#allocation3]] %s985_s0 }
   0x2   :  { %12 = vsyncpa [#allocation5], 0 }
   0x3   :  { %14 = vsyncpa [#allocation5 + $0x1], 0  ;;  %s833_s20 = smov 0   ;;  %s835_s21 = smov 0  }
   0x4   :  { %s837_s22 = smov 0   ;;  %s839_s23 = smov 0  }
   0x5   :  { %s841_s24 = smov 0   ;;  %s843_s25 = smov 0  }
   0x6 LB: > { %s643_s0 = sadd.s32 4294967295, %s796_s25   ;;  %s39_s26 = sadd.s32 1, %s792_s24  ;;  %s796_s25 = sphi %s843_s25, %s20_s25   ;;  %s792_s24 = sphi %s841_s24, %s1000_s24   ;;  %s788_s23 = sphi %s839_s23, %s999_s23   ;;  %s784_s22 = sphi %s837_s22, %s998_s22   ;;  %s780_s21 = sphi %s835_s21, %s997_s21   ;;  %s776_s20 = sphi %s833_s20, %s996_s20  }
   0x7   : > { %p41_p0 = scmp.ge.s32.totalorder %s39_s26, 2  ;;  %s50_s27 = sld [smem:[#allocation3]] }
   0x8   : > { %s64_s28 = sadd.s32 1, %s784_s22  ;;  %p71_p1 = scmp.ne.s32.totalorder %s784_s22, %s780_s21 }
   0x9   : > { %s1002_s26 = smov (%p41_p0, %s39_s26), 0  ;;  %p72_p2 = scmp.eq.s32.totalorder %s796_s25, 0 }
   0xa   : > { %p77_p3 = scmp.ne.s32.totalorder %s780_s21, %s776_s20  ;;  %s59_s29 = ssub.s32 %s792_s24, %s1002_s26 }
   0xb   : > { %p78_p4 = scmp.eq.s32.totalorder %s643_s0, 0  ;;  %p872_p5 = por %p72_p2, %p71_p1 }
   0xc   : > { %p665_p7 = scmp.lt.s32.totalorder %s796_s25, 2  ;;  %p62_p8 = scmp.eq.s32.totalorder %s59_s29, 0 }
   0xd   : > { %p876_p6 = por %p78_p4, %p77_p3  ;;  %s229_s7 = sand.u32 1, %s784_s22  }
   0xe   : > { %s647_s8 = sshll.u32 %s229_s7, 3  ;;  %s648_s10 = sshll.u32 %s50_s27, 1 }
   0xf   : > { %s883_s9 = scalar_select %p62_p8, %s784_s22, %s64_s28  }
  0x10   : > { %s649_s11 = sshll.u32 %s792_s24, 1  ;;  %s233_s12 = scalar_lea.vmem [#allocation4], %s647_s8 }
  0x11   : > { %s251_s13 = sshll.u32 %s233_s12, 4  ;;  %s247_s14 = sadd.s32 %s649_s11, %s648_s10  ;;  %s886_s13 = int_to_ptr.vmem [resolvable:$true] %s251_s13 }
  0x12   : > { %s650_s15 = sshll.u32 %s247_s14, 6  ;;  %p890_p9 = pnand %p665_p7, %p872_p5 }
  0x13   : > { %s897_s19 = scalar_lea.hbm %s986_s1, %s650_s15  ;;  %s230_s20 = scalar_lea.sflag [#allocation5], %s229_s7 }
  0x14   : > { %s716_s0 = scalar_lea.hbm %s897_s19, 128  ;;  %p718_p13 = pneg %p890_p9 }
  0x15   : > { %p717_p12 = scmp.ne.s32.totalorder %s897_s19, %s716_s0  ;;  %s721_s29 = scalar_lea.hbm %s986_s1, 256 }
  0x16   : > { %p722_p2 = scmp.lt.u32.totalorder %s897_s19, %s986_s1  ;;  %p723_p3 = scmp.lt.u32.totalorder %s721_s29, %s716_s0 }
  0x17   : > { %p719_p0 = pnand %p718_p13, %p717_p12  ;;  %p725_p5 = scmp.lt.u32.totalorder %s716_s0, %s897_s19 }
  0x18   : > { %p724_p4 = por %p723_p3, %p722_p2 }
  0x19   : > { %p720_p1 = pneg %p719_p0 }
  0x1a   : > { %p726_p7 = por %p725_p5, %p724_p4 }
  0x1c   : > { %p727_p8 = pnand %p726_p7, %p720_p1 }
  0x1e   : > { %730 = shalt.err (!%p727_p8)
}
  0x1f   : > { %s731_s7 = scalar_lea.vmem %s886_s13, 128  ;;  %s798_s10 = smov [#allocation4]  }
  0x20   : > { %p732_p12 = scmp.ne.s32.totalorder %s886_s13, %s731_s7  ;;  %s736_s11 = sshll.u32 %s798_s10, 4  ;;  %s737_s11 = int_to_ptr.vmem [resolvable:$false] %s736_s11 }
  0x21   : > { %s738_s12 = scalar_lea.vmem %s737_s11, 256  ;;  %p739_p11 = scmp.lt.s32.totalorder %s886_s13, %s737_s11 }
  0x22   : > { %p734_p0 = pnand %p732_p12, %p718_p13  ;;  %p740_p2 = scmp.lt.s32.totalorder %s738_s12, %s731_s7 }
  0x24   : > { %p735_p10 = pneg %p734_p0  ;;  %p741_p3 = por %p740_p2, %p739_p11 }
  0x26   : > { %p742_p4 = pnand %p741_p3, %p735_p10 }
  0x28   : > { %745 = shalt.err (!%p742_p4)
}
  0x29   : > { %664 = dma.hbm_to_vmem [thread:$0]  (!%p890_p9), %s897_s19, 128, %s886_s13, %s230_s20  }
  0x2a   : > { %p994_p1 = scmp.lt.s32.totalorder %s796_s25, 3  ;;  %p995_p5 = scmp.ge.s32.totalorder %s796_s25, 1 }
  0x2c   : > { %p285_p13 = pnand %p995_p5, %p994_p1 }
  0x2d   : > { %s290_s14 = sand.u32 (!%p285_p13), 1, %s780_s21  }
  0x2e   : > { %288 = sbr.rel (%p285_p13) target bundleno = 227 (0xe3), region = 28  ;;  %s652_s15 = sshll.u32 (!%p285_p13), %s290_s14, 3 }
  0x2f   : > { %s291_s17 = scalar_lea.sflag (!%p285_p13), [#allocation5], %s290_s14  ;;  %s294_s18 = scalar_lea.vmem (!%p285_p13), [#allocation4], %s652_s15 }
  0x35   : > { %771 = dma.done.wait (%p876_p6), %s291_s17, 128  }
  0x36   : > { %773 = vsyncadd (%p876_p6), %s291_s17, 4294967168  ;;  %p368_p10 = scmp.lt.s32.totalorder %s788_s23, 1  ;;  %s366_s16 = sld [smem:[#allocation3]]  ;;  %v417_v0 = vlaneseq  ;;  %vm408_vm0 = vcmask 3072   ;;  %v799_v1 = vmov 0.0   ;;  %vm454_vm1 = vcmask 1040384  }
  0x37   : > { %v413_v8 = vld [vmem:[%s294_s18] sm:$0xff]  ;;  %vm431_vm2 = vcmask 1043456   ;;  %vm411_vm3 = vcmask 0  }
  0x38   : > { %s1004_s23 = smov (!%p368_p10, %s788_s23), 1  ;;  %v418_v2 = vshrl.u32 %v417_v0, 7  ;;  %v442_v14 = vcombine.high %v413_v8, %v413_v8  ;;  %v444_v18 = vsel %vm431_vm2, %v413_v8, 0.0 }
  0x39   : > { %s655_s13 = sshll.u32 %s1004_s23, 2  ;;  %s654_s27 = sshll.u32 %s1004_s23, 1 }
  0x3a   : > { %s945_s0 = scalar_lea.vmem %s988_s3, %s655_s13  ;;  %v419_v3 = vsub.s32 0, %v418_v2  ;;  %v423_v4 = vsub.s32 1, %v418_v2  ;;  %v445_v19 = vsel %vm431_vm2, %v442_v14, 0.0  ;;  %s403_s11 = scalar_lea.vmem %s990_s5, %s1004_s23 }
  0x3b   : > { %409 = vst.msk [vmem:[%s945_s0] sm:$0xf] %vm408_vm0, %v799_v1  ;;  %v446_v21 = vadd.f32 %v445_v19, %v444_v18  ;;  %s397_s15 = scalar_lea.vmem %s989_s4, %s655_s13 }
  0x3c   : > { %s653_s6 = sshll.u32 %s366_s16, 1  ;;  %412 = vst.msk [vmem:[%s403_s11] sm:$0x1] %vm411_vm3, %v799_v1 }
  0x3d   : > { %p370_p6 = scmp.lt.s32.totalorder %s653_s6, 1  ;;  %410 = vst.msk [vmem:[%s397_s15] sm:$0xf] %vm408_vm0, %v799_v1 }
  0x3f   : > { %s1006_s6 = smov (!%p370_p6, %s653_s6), 1 }
  0x40   : > { %s373_s28 = sadd.s32 %s654_s27, %s1006_s6 }
  0x41   : > { %s374_s8 = scalar_lea.vmem %s987_s2, %s373_s28 }
  0x42   : > { %v414_v5 = vld [vmem:[%s374_s8] sm:$0x3] }
  0x43   : > { %v420_v6 = vrot.slane %v414_v5, %v419_v3  ;;  %v424_v7 = vrot.slane %v414_v5, %v423_v4  ;;  %v451_v22 = vld [vmem:[%s403_s11] sm:$0x1] }
  0x44   : > { %v415_v25 = vld [vmem:[%s945_s0] sm:$0xf] }
  0x45   : > { %v425_v9 = vcombine.low %v420_v6, %v424_v7  ;;  %v455_v10 = vsel %vm454_vm1, %v420_v6, 0.0  ;;  %v456_v11 = vsel %vm454_vm1, %v424_v7, 0.0  ;;  %v440_v28 = vld [vmem:[%s397_s15] sm:$0xf] }
  0x46   : > { %v457_v12 = vadd.f32 %v456_v11, %v455_v10 }
  0x47   : > { %v427_v13 = vmul.f32 %v425_v9, %v413_v8 }
  0x48   : > { %458 = vadd.xlane.f32.xlu1 %v457_v12 }
  0x49   : > { %v429_v15 = vcombine.high %v427_v13, %v427_v13  ;;  %v432_v16 = vsel %vm431_vm2, %v427_v13, 0.0 }
  0x4b   : > { %v433_v17 = vsel %vm431_vm2, %v429_v15, 0.0 }
  0x4c   : > { %v434_v20 = vadd.f32 %v433_v17, %v432_v16 }
  0x4e   : > { %435 = vadd.xlane.f32.xlu0 %v434_v20 }
  0x52   : > { %447 = vadd.xlane.f32.xlu0 %v446_v21 }
  0xd5   : > { %v459_v23 = vpop.xlane.xlu1 %458 }
  0xd6   : > { %v460_v24 = vadd.f32 %v459_v23, %v451_v22 }
  0xd8   : > { %462 = vst.msk [vmem:[%s403_s11] sm:$0x1] %vm411_vm3, %v460_v24 }
  0xdb   : > { %v436_v26 = vpop.xlane.xlu0 %435 }
  0xdc   : > { %v437_v27 = vadd.f32 %v436_v26, %v415_v25 }
  0xde   : > { %439 = vst.msk [vmem:[%s945_s0] sm:$0xf] %vm408_vm0, %v437_v27 }
  0xdf   : > { %v448_v29 = vpop.xlane.xlu0 %447 }
  0xe0   : > { %v449_v30 = vadd.f32 %v448_v29, %v440_v28 }
  0xe2   : > { %450 = vst.msk [vmem:[%s397_s15] sm:$0xf] %vm408_vm0, %v449_v30 }
  0xe3 PF: > { %s20_s25 = sadd.s32 1, %s796_s25   ;;  %s996_s20 = smov %s780_s21 }
  0xe4   : > { %p17_p9 = scmp.ge.s32.totalorder %s20_s25, 4   ;;  %s997_s21 = smov %s784_s22 }
  0xe5   : > { %s998_s22 = smov %s883_s9  ;;  %s999_s23 = smov %s792_s24 }
  0xe6   : > { %s1000_s24 = smov %s1002_s26  ;;  %19 = sbr.rel (!%p17_p9) target bundleno = 6 (0x6), region = 99 }
  0xed   :  { %526 = vsyncpa [#allocation5], 1 }
  0xee   :  { %528 = vsyncpa [#allocation5 + $0x1], 1 }

</bundles_post_ra>
